<compile_context>
chip_gen: v5e
topology: v5e:2x2
jax: 0.10.0
libtpu: 0.0.40
codegen_flags: <defaults>
</compile_context>

<pallas_src>
import functools

import jax
import jax.numpy as jnp
from jax.experimental import pallas as pl
from jax.experimental.pallas import tpu as pltpu

_LANE = 128


def cam_kernel(x_ref, w1_ref, w2_ref, o_ref, sum_acc, max_acc,
               *, inv_hw, hw_total, hw_block, ragged):
    h = pl.program_id(1)
    n_hw = pl.num_programs(1)

    x = x_ref[...]                                      # (bt, C, hw_block), input dtype

    if ragged:
        # Only reached when HW is not divisible by hw_block: mask the padded tail
        # of the last block (0 for the sum branch, -inf for the max branch).
        lane = jax.lax.broadcasted_iota(jnp.int32, x.shape, 2)
        valid = (h * hw_block + lane) < hw_total
        x_sum = jnp.where(valid, x, jnp.zeros_like(x)).astype(jnp.float32)
        x_max = jnp.where(valid, x, jnp.full_like(x, -jnp.inf))
    else:
        x_sum = x.astype(jnp.float32)
        x_max = x

    # Element-wise (VPU-only) accumulation into full-width scratch columns.
    # No XLU reduction, no relayout inside the streaming loop.
    @pl.when(h == 0)
    def _():
        sum_acc[...] = x_sum
        max_acc[...] = x_max

    @pl.when(h > 0)
    def _():
        sum_acc[...] = sum_acc[...] + x_sum
        max_acc[...] = jnp.maximum(max_acc[...], x_max)

    @pl.when(h == n_hw - 1)
    def _():
        # Single cross-lane reduction + relayout per batch tile (epilogue only).
        avg = jnp.sum(sum_acc[...], axis=-1) * inv_hw                   # (bt, C) f32
        mx = jnp.max(max_acc[...], axis=-1).astype(jnp.float32)         # (bt, C) f32
        bt = o_ref.shape[0]

        # Fused shared MLP: stack avg/max along M -> one matmul pair on the MXU.
        y = jnp.concatenate([avg, mx], axis=0)                          # (2*bt, C)
        w1 = w1_ref[...].astype(jnp.float32)
        w2 = w2_ref[...].astype(jnp.float32)
        hidden = jnp.maximum(
            jnp.dot(y, w1, preferred_element_type=jnp.float32), 0.0)
        out = jnp.dot(hidden, w2, preferred_element_type=jnp.float32)
        gate = jax.nn.sigmoid(out[:bt] + out[bt:])                      # (bt, C)
        o_ref[...] = gate[:, None, :].astype(o_ref.dtype)


def _physical_vmem_bytes():
    """Physical VMEM of this generation; conservative 64 MiB (v7x) if unknown."""
    try:
        return int(pltpu.get_tpu_info().vmem_capacity_bytes)
    except Exception:
        return 64 * 1024 * 1024


def _choose_tiles(B, C, HW, itemsize):
    """Pick (batch_tile, hw_block).

    hw_block is either the full HW (small plane, one step per batch tile) or a
    multiple of 128 (streaming tiles; ragged tail masked in-kernel).  The byte
    target keeps block + f32 sum / native max accumulators + double buffering
    comfortably inside every generation's scoped VMEM once the limit is set.
    """
    target = 6 * 1024 * 1024 if itemsize >= 4 else 4 * 1024 * 1024
    hw_pad = ((HW + _LANE - 1) // _LANE) * _LANE
    hw_cap = max(_LANE, (target // (C * itemsize)) // _LANE * _LANE)
    if hw_pad <= hw_cap:
        hw_block = HW                       # whole plane per step, no masking needed
    else:
        hw_block = hw_cap                   # 128-aligned streaming tile
        if HW % _LANE == 0:                 # prefer a tile that divides HW exactly
            d = hw_cap
            while d >= _LANE and HW % d != 0:
                d -= _LANE
            if d >= max(_LANE, hw_cap // 2):
                hw_block = d

    # Batch grouping amortizes per-step overhead for small planes; cap at B//2 so
    # the "parallel" batch axis keeps >= 2 programs for v7x megacore sharding.
    # TODO(synk): for B == 1 on v7x, split the HW reduction across the two cores.
    bt_cap = max(1, B // 2) if B >= 2 else 1
    step_bytes = C * hw_block * itemsize
    bt = 1
    for cand in range(min(B, bt_cap), 0, -1):
        if B % cand == 0 and cand * step_bytes <= target:
            bt = cand
            break
    return bt, hw_block


def channel_attention(x, w1, w2):
    """x: (B, C, H, W); w1: (C, C//r); w2: (C//r, C). Returns gate (B, C, 1, 1)."""
    B, C, H, W = x.shape
    HW = H * W
    Cr = w1.shape[1]
    itemsize = x.dtype.itemsize
    x_flat = x.reshape(B, C, HW)

    bt, hw_block = _choose_tiles(B, C, HW, itemsize)
    nb = B // bt
    nhw = (HW + hw_block - 1) // hw_block
    ragged = (HW % hw_block) != 0

    kernel = functools.partial(
        cam_kernel, inv_hw=float(1.0 / HW), hw_total=HW,
        hw_block=hw_block, ragged=ragged)

    # Double-buffered working-set estimate; scoped VMEM is set explicitly and
    # clamped below the generation's physical VMEM (64 MiB on v7x).
    blk_elems = bt * C * hw_block
    est = (2 * blk_elems * itemsize                       # double-buffered x blocks
           + blk_elems * 4                                # f32 sum accumulator
           + blk_elems * itemsize                         # native-dtype max accumulator
           + 2 * (w1.size * w1.dtype.itemsize + w2.size * w2.dtype.itemsize)
           + 2 * bt * C * itemsize)
    phys = _physical_vmem_bytes()
    vmem_limit = int(min(max(est + 16 * 1024 * 1024, 32 * 1024 * 1024),
                         phys - 4 * 1024 * 1024))

    gate = pl.pallas_call(
        kernel,
        out_shape=jax.ShapeDtypeStruct((B, 1, C), x.dtype),
        grid_spec=pltpu.PrefetchScalarGridSpec(
            num_scalar_prefetch=0,
            grid=(nb, nhw),
            in_specs=[
                pl.BlockSpec((bt, C, hw_block), lambda b, h: (b, 0, h)),
                pl.BlockSpec((C, Cr), lambda b, h: (0, 0)),
                pl.BlockSpec((Cr, C), lambda b, h: (0, 0)),
            ],
            out_specs=pl.BlockSpec((bt, 1, C), lambda b, h: (b, 0, 0)),
            scratch_shapes=[
                pltpu.VMEM((bt, C, hw_block), jnp.float32),   # running column sums (f32)
                pltpu.VMEM((bt, C, hw_block), x.dtype),       # running column maxes (exact)
            ],
        ),
        compiler_params=pltpu.CompilerParams(
            dimension_semantics=("parallel", "arbitrary"),
            vmem_limit_bytes=vmem_limit),
    )(x_flat, w1, w2)

    return gate.reshape(B, C, 1, 1)


def channel_attention_ref(x, w1, w2):
    """Pure-JAX reference mirroring the PyTorch forward."""
    xf = x.astype(jnp.float32)
    avg = jnp.mean(xf, axis=(2, 3))                          # (B, C)
    mx = jnp.max(xf, axis=(2, 3))                            # (B, C)

    def mlp(y):
        return jnp.maximum(y @ w1, 0.0) @ w2

    gate = jax.nn.sigmoid(mlp(avg) + mlp(mx))
    return gate[:, :, None, None].astype(x.dtype)


if __name__ == "__main__":
    B, C, H, W = 2, 32, 16, 16
    ratio = 16
    Cr = C // ratio

    key = jax.random.PRNGKey(0)
    kx, k1, k2 = jax.random.split(key, 3)
    x = jax.random.normal(kx, (B, C, H, W), dtype=jnp.float32)
    # Conv2d(C, Cr, 1, bias=False) weight (Cr, C, 1, 1) stored transposed as (C, Cr);
    # Conv2d(Cr, C, 1, bias=False) weight (C, Cr, 1, 1) stored transposed as (Cr, C).
    w1 = jax.random.normal(k1, (C, Cr), dtype=jnp.float32) * (1.0 / jnp.sqrt(C))
    w2 = jax.random.normal(k2, (Cr, C), dtype=jnp.float32) * (1.0 / jnp.sqrt(Cr))

    out = jax.block_until_ready(channel_attention(x, w1, w2))
    ref = jax.block_until_ready(channel_attention_ref(x, w1, w2))

    assert out.shape == (B, C, 1, 1)
    assert jnp.allclose(out, ref, atol=1e-5, rtol=1e-5)
    print("KERNEL_OK")
</pallas_src>

<mosaic_0001>
module attributes {stable_mosaic.version = 11 : i64} {
  func.func @cam_kernel(%arg0: i32, %arg1: i32, %arg2: memref<1x32x256xf32, #tpu.memory_space<vmem>>, %arg3: memref<32x2xf32, #tpu.memory_space<vmem>>, %arg4: memref<2x32xf32, #tpu.memory_space<vmem>>, %arg5: memref<1x1x32xf32, #tpu.memory_space<vmem>>, %arg6: memref<1x32x256xf32, #tpu.memory_space<vmem>>, %arg7: memref<1x32x256xf32, #tpu.memory_space<vmem>>) attributes {dimension_semantics = [#tpu.dimension_semantics<parallel>, #tpu.dimension_semantics<arbitrary>], iteration_bounds = array<i64: 2, 1>, scalar_prefetch = 0 : i64, scratch_operands = 2 : i64, tpu.core_type = #tpu.core_type<tc>, window_params = [{transform_indices = @transform_0, window_bounds = array<i64: 1, 32, 256>}, {pipeline_mode = #tpu.pipeline_mode<synchronous>, transform_indices = @transform_1, window_bounds = array<i64: 32, 2>}, {pipeline_mode = #tpu.pipeline_mode<synchronous>, transform_indices = @transform_2, window_bounds = array<i64: 2, 32>}, {transform_indices = @transform_3, window_bounds = array<i64: 1, 1, 32>}]} {
    %c0 = arith.constant 0 : index
    %c0_0 = arith.constant 0 : index
    %c0_1 = arith.constant 0 : index
    %0 = vector.load %arg2[%c0, %c0_0, %c0_1] : memref<1x32x256xf32, #tpu.memory_space<vmem>>, vector<1x32x256xf32>
    %c0_i32 = arith.constant 0 : i32
    %1 = arith.cmpi eq, %arg1, %c0_i32 : i32
    %2 = arith.extui %1 : i1 to i32
    %c0_i32_2 = arith.constant 0 : i32
    %3 = arith.cmpi ne, %2, %c0_i32_2 : i32
    scf.if %3 {
      %c0_7 = arith.constant 0 : index
      %c0_8 = arith.constant 0 : index
      %c0_9 = arith.constant 0 : index
      %10 = vector.load %arg6[%c0_7, %c0_8, %c0_9] : memref<1x32x256xf32, #tpu.memory_space<vmem>>, vector<1x32x256xf32>
      tpu.vector_store %arg6[%c0_7, %c0_8, %c0_9], %0 {strides = array<i32>} : memref<1x32x256xf32, #tpu.memory_space<vmem>>, vector<1x32x256xf32>,
      %c0_10 = arith.constant 0 : index
      %c0_11 = arith.constant 0 : index
      %c0_12 = arith.constant 0 : index
      %11 = vector.load %arg7[%c0_10, %c0_11, %c0_12] : memref<1x32x256xf32, #tpu.memory_space<vmem>>, vector<1x32x256xf32>
      tpu.vector_store %arg7[%c0_10, %c0_11, %c0_12], %0 {strides = array<i32>} : memref<1x32x256xf32, #tpu.memory_space<vmem>>, vector<1x32x256xf32>,
    } else {
    }
    %c0_i32_3 = arith.constant 0 : i32
    %4 = arith.cmpi sgt, %arg1, %c0_i32_3 : i32
    %5 = arith.extui %4 : i1 to i32
    %c0_i32_4 = arith.constant 0 : i32
    %6 = arith.cmpi ne, %5, %c0_i32_4 : i32
    scf.if %6 {
      %c0_7 = arith.constant 0 : index
      %c0_8 = arith.constant 0 : index
      %c0_9 = arith.constant 0 : index
      %10 = vector.load %arg6[%c0_7, %c0_8, %c0_9] : memref<1x32x256xf32, #tpu.memory_space<vmem>>, vector<1x32x256xf32>
      %11 = arith.addf %10, %0 : vector<1x32x256xf32>
      %c0_10 = arith.constant 0 : index
      %c0_11 = arith.constant 0 : index
      %c0_12 = arith.constant 0 : index
      %12 = vector.load %arg6[%c0_10, %c0_11, %c0_12] : memref<1x32x256xf32, #tpu.memory_space<vmem>>, vector<1x32x256xf32>
      tpu.vector_store %arg6[%c0_10, %c0_11, %c0_12], %11 {strides = array<i32>} : memref<1x32x256xf32, #tpu.memory_space<vmem>>, vector<1x32x256xf32>,
      %c0_13 = arith.constant 0 : index
      %c0_14 = arith.constant 0 : index
      %c0_15 = arith.constant 0 : index
      %13 = vector.load %arg7[%c0_13, %c0_14, %c0_15] : memref<1x32x256xf32, #tpu.memory_space<vmem>>, vector<1x32x256xf32>
      %14 = arith.maximumf %13, %0 : vector<1x32x256xf32>
      %c0_16 = arith.constant 0 : index
      %c0_17 = arith.constant 0 : index
      %c0_18 = arith.constant 0 : index
      %15 = vector.load %arg7[%c0_16, %c0_17, %c0_18] : memref<1x32x256xf32, #tpu.memory_space<vmem>>, vector<1x32x256xf32>
      tpu.vector_store %arg7[%c0_16, %c0_17, %c0_18], %14 {strides = array<i32>} : memref<1x32x256xf32, #tpu.memory_space<vmem>>, vector<1x32x256xf32>,
    } else {
    }
    %c0_i32_5 = arith.constant 0 : i32
    %7 = arith.cmpi eq, %arg1, %c0_i32_5 : i32
    %8 = arith.extui %7 : i1 to i32
    %c0_i32_6 = arith.constant 0 : i32
    %9 = arith.cmpi ne, %8, %c0_i32_6 : i32
    scf.if %9 {
      %c0_7 = arith.constant 0 : index
      %c0_8 = arith.constant 0 : index
      %c0_9 = arith.constant 0 : index
      %10 = vector.load %arg6[%c0_7, %c0_8, %c0_9] : memref<1x32x256xf32, #tpu.memory_space<vmem>>, vector<1x32x256xf32>
      %cst = arith.constant dense<0.000000e+00> : vector<1x32xf32>
      %11 = vector.multi_reduction <add>, %10, %cst [2] : vector<1x32x256xf32> to vector<1x32xf32>
      %cst_10 = arith.constant 3.906250e-03 : f32
      %12 = vector.broadcast %cst_10 : f32 to vector<1x32xf32>
      %13 = arith.mulf %11, %12 : vector<1x32xf32>
      %c0_11 = arith.constant 0 : index
      %c0_12 = arith.constant 0 : index
      %c0_13 = arith.constant 0 : index
      %14 = vector.load %arg7[%c0_11, %c0_12, %c0_13] : memref<1x32x256xf32, #tpu.memory_space<vmem>>, vector<1x32x256xf32>
      %cst_14 = arith.constant dense<0xFF800000> : vector<1x32xf32>
      %15 = vector.multi_reduction <maximumf>, %14, %cst_14 [2] : vector<1x32x256xf32> to vector<1x32xf32>
      %16 = tpu.concatenate %13, %15 in 0 : vector<1x32xf32>, vector<1x32xf32> -> vector<2x32xf32>
      %c0_15 = arith.constant 0 : index
      %c0_16 = arith.constant 0 : index
      %17 = vector.load %arg3[%c0_15, %c0_16] : memref<32x2xf32, #tpu.memory_space<vmem>>, vector<32x2xf32>
      %c0_17 = arith.constant 0 : index
      %c0_18 = arith.constant 0 : index
      %18 = vector.load %arg4[%c0_17, %c0_18] : memref<2x32xf32, #tpu.memory_space<vmem>>, vector<2x32xf32>
      %cst_19 = arith.constant dense<0.000000e+00> : vector<2x2xf32>
      %19 = tpu.matmul %16, %17, %cst_19 {dimension_numbers = #tpu.dot_dimension_numbers<[1], [0], [0], [1], [0, 0, 1, 1], [], []>} : vector<2x32xf32>, vector<32x2xf32>, vector<2x2xf32> -> vector<2x2xf32>
      %cst_20 = arith.constant 0.000000e+00 : f32
      %20 = vector.broadcast %cst_20 : f32 to vector<2x2xf32>
      %21 = arith.maximumf %19, %20 : vector<2x2xf32>
      %cst_21 = arith.constant dense<0.000000e+00> : vector<2x32xf32>
      %22 = tpu.matmul %21, %18, %cst_21 {dimension_numbers = #tpu.dot_dimension_numbers<[1], [0], [0], [1], [0, 0, 1, 1], [], []>} : vector<2x2xf32>, vector<2x32xf32>, vector<2x32xf32> -> vector<2x32xf32>
      %23 = vector.extract_strided_slice %22 {offsets = [0, 0], sizes = [1, 32], strides = [1, 1]} : vector<2x32xf32> to vector<1x32xf32>
      %24 = vector.extract_strided_slice %22 {offsets = [1, 0], sizes = [1, 32], strides = [1, 1]} : vector<2x32xf32> to vector<1x32xf32>
      %25 = arith.addf %23, %24 : vector<1x32xf32>
      %26 = arith.negf %25 : vector<1x32xf32>
      %27 = math.exp %26 : vector<1x32xf32>
      %cst_22 = arith.constant 1.000000e+00 : f32
      %28 = vector.broadcast %cst_22 : f32 to vector<1x32xf32>
      %29 = arith.addf %28, %27 : vector<1x32xf32>
      %30 = arith.divf %28, %29 : vector<1x32xf32>
      %31 = vector.shape_cast %30 : vector<1x32xf32> to vector<1x1x32xf32>
      %c0_23 = arith.constant 0 : index
      %c0_24 = arith.constant 0 : index
      %c0_25 = arith.constant 0 : index
      %32 = vector.load %arg5[%c0_23, %c0_24, %c0_25] : memref<1x1x32xf32, #tpu.memory_space<vmem>>, vector<1x1x32xf32>
      tpu.vector_store %arg5[%c0_23, %c0_24, %c0_25], %31 {strides = array<i32>} : memref<1x1x32xf32, #tpu.memory_space<vmem>>, vector<1x1x32xf32>,
    } else {
    }
    return
  }
  func.func @transform_0(%arg0: i32, %arg1: i32) -> (i32, i32, i32) {
    %c0_i32 = arith.constant 0 : i32
    %c0_i32_0 = arith.constant 0 : i32
    return %arg0, %c0_i32, %arg1 : i32, i32, i32
  }
  func.func @transform_1(%arg0: i32, %arg1: i32) -> (i32, i32) {
    %c0_i32 = arith.constant 0 : i32
    %c0_i32_0 = arith.constant 0 : i32
    %c0_i32_1 = arith.constant 0 : i32
    return %c0_i32, %c0_i32_0 : i32, i32
  }
  func.func @transform_2(%arg0: i32, %arg1: i32) -> (i32, i32) {
    %c0_i32 = arith.constant 0 : i32
    %c0_i32_0 = arith.constant 0 : i32
    %c0_i32_1 = arith.constant 0 : i32
    return %c0_i32, %c0_i32_0 : i32, i32
  }
  func.func @transform_3(%arg0: i32, %arg1: i32) -> (i32, i32, i32) {
    %c0_i32 = arith.constant 0 : i32
    %c0_i32_0 = arith.constant 0 : i32
    %c0_i32_1 = arith.constant 0 : i32
    return %arg0, %c0_i32, %c0_i32_0 : i32, i32, i32
  }
}

</mosaic_0001>

<bundles_post_ra>
// kernel: tpu_custom_call.1
= control target key start
LH: loop header
LB: loop body
LE: loop exit
PB: predicated region body
PF: predicated region fallthrough
CT: control target
= control target key end

     0   :  { %8 = vsyncpa [#allocation5], 0  ;;  %s897_s0 = inlined_call_operand.hbm [shape: f32[2,32,256], index: 0, kind: input, shape index: {}]   ;;  %s898_s1 = inlined_call_operand.vmem [shape: f32[32,2], index: 1, kind: input, shape index: {}]   ;;  %s899_s2 = inlined_call_operand.vmem [shape: f32[2,32], index: 2, kind: input, shape index: {}]   ;;  %s900_s3 = inlined_call_operand.hbm [shape: f32[2,1,32], index: 3, kind: output, shape index: {}]  }
   0x1   :  { %10 = vsyncpa [#allocation5 + $0x1], 0 }
   0x2   :  { %11 = vsyncpa [#allocation6], 0 }
   0x3   :  { %13 = vsyncpa [#allocation6 + $0x1], 0  ;;  %s761_s12 = smov 0   ;;  %s763_s13 = smov 0  }
   0x4   :  { %s765_s14 = smov 0   ;;  %s767_s15 = smov 0  }
   0x5   :  { %s769_s16 = smov 0   ;;  %s771_s17 = smov 0  }
   0x6 LB: > { %s541_s18 = sadd.s32 4294967295, %s737_s17   ;;  %s542_s19 = sadd.s32 4294967294, %s737_s17   ;;  %s737_s17 = sphi %s771_s17, %s19_s17   ;;  %s733_s16 = sphi %s769_s16, %s909_s16   ;;  %s729_s15 = sphi %s767_s15, %s908_s15   ;;  %s725_s14 = sphi %s765_s14, %s907_s14   ;;  %s721_s13 = sphi %s763_s13, %s906_s13   ;;  %s717_s12 = sphi %s761_s12, %s905_s12  }
   0x7   : > { %s31_s20 = sadd.s32 1, %s733_s16  ;;  %s40_s21 = sadd.s32 1, %s725_s14 }
   0x8   : > { %p33_p0 = scmp.ge.s32.totalorder %s31_s20, 2  ;;  %p47_p1 = scmp.ne.s32.totalorder %s725_s14, %s721_s13 }
   0x9   : > { %p48_p2 = scmp.eq.s32.totalorder %s737_s17, 0  ;;  %p53_p3 = scmp.ne.s32.totalorder %s721_s13, %s717_s12 }
   0xa   : > { %s911_s20 = smov (%p33_p0, %s31_s20), 0  ;;  %p54_p5 = scmp.eq.s32.totalorder %s541_s18, 0 }
   0xb   : > { %p802_p4 = por %p48_p2, %p47_p1  ;;  %s35_s23 = ssub.s32 %s733_s16, %s911_s20 }
   0xc   : > { %p119_p6 = scmp.eq.s32.totalorder %s541_s18, 1  ;;  %p38_p7 = scmp.eq.s32.totalorder %s35_s23, 0 }
   0xd   : > { %p808_p8 = por %p54_p5, %p53_p3  ;;  %p125_p10 = scmp.eq.s32.totalorder %s542_s19, 1 }
   0xe   : > { %p812_p9 = por %p119_p6, %p47_p1  ;;  %p544_p12 = scmp.ge.s32.totalorder %s737_s17, 2 }
   0xf   : > { %s817_s26 = scalar_select %p38_p7, %s725_s14, %s40_s21  }
  0x10   : > { %p819_p11 = por %p125_p10, %p53_p3  ;;  %p569_p13 = scmp.lt.s32.totalorder %s737_s17, 2 }
  0x11   : > { %s151_s28 = sand.u32 1, %s725_s14   ;;  %s556_s30 = sshll.u32 %s733_s16, 6 }
  0x12   : > { %s545_s29 = sshll.u32 %s151_s28, 6  ;;  %s162_s6 = scalar_lea.hbm %s897_s0, %s556_s30 }
  0x13   : > { %s155_s7 = scalar_lea.vmem [#allocation4], %s545_s29  ;;  %s163_s9 = sshll.u32 %s162_s6, 4  ;;  %s164_s9 = int_to_ptr.hbm [resolvable:$true] %s163_s9 }
  0x14   : > { %s165_s8 = sshll.u32 %s155_s7, 4  ;;  %p562_p0 = pnand %p569_p13, %p802_p4  ;;  %s166_s8 = int_to_ptr.vmem [resolvable:$true] %s165_s8 }
  0x15   : > { %p548_p1 = scmp.ge.s32.totalorder %s737_s17, 1  ;;  %s152_s10 = scalar_lea.sflag [#allocation5], %s151_s28 }
  0x16   : > { %s739_s11 = smov 256   ;;  %s740_s18 = smov 16  }
  0x17   : > { %564 = dma.hbm_to_vmem [thread:$0]  (!%p562_p0), %s164_s9, 1024, %s166_s8, %s152_s10, %s739_s11, %s739_s11, %s740_s18  }
  0x18   : > { %p173_p2 = scmp.lt.s32.totalorder %s737_s17, 3 }
  0x1a   : > { %p174_p3 = pnand %p548_p1, %p173_p2 }
  0x1b   : > { %s835_s19 = sand.u32 (!%p174_p3), 1, %s721_s13  }
  0x1c   : > { %177 = sbr.rel (%p174_p3) target bundleno = 463 (0x1cf), region = 32  ;;  %s549_s21 = sshll.u32 (!%p174_p3), %s835_s19, 6 }
  0x1d   : > { %s180_s23 = scalar_lea.sflag (!%p174_p3), [#allocation5], %s835_s19  ;;  %s183_s29 = scalar_lea.vmem (!%p174_p3), [#allocation4], %s549_s21 }
  0x21   : > { %708 = dma.done.wait (%p808_p8), %s180_s23, 1024  }
  0x22   : > { %710 = vsyncadd (%p808_p8), %s180_s23, 4294966272  ;;  %v207_v0 = vld [vmem:[%s183_s29] sm:$0xff]  ;;  %v208_v1 = vld [vmem:[%s183_s29 + $0x8] sm:$0xff]  ;;  %v338_v23 = vlaneseq  ;;  %vm343_vm0 = vcmask 130112   ;;  %vm347_vm1 = vcmask 195712   ;;  %vm351_vm2 = vcmask 261312   ;;  %s460_s18 = scalar_lea.hbm %s900_s3, %s729_s15 }
  0x23   : > { %v211_v2 = vld [vmem:[%s183_s29 + $0x20] sm:$0xff]  ;;  %v322_v3 = vmax.f32 %v207_v0, %v208_v1  ;;  %v298_v4 = vadd.f32 %v208_v1, %v207_v0  ;;  %v212_v5 = vld [vmem:[%s183_s29 + $0x28] sm:$0xff]  ;;  %v209_v7 = vld [vmem:[%s183_s29 + $0x10] sm:$0xff]  ;;  %vm366_vm3 = vcmask 1040384   ;;  %vm373_vm4 = vcmask 261120   ;;  %s205_s21 = scalar_lea.vmem [#allocation7], %s835_s19 }
  0x24   : > { %v304_v6 = vadd.f32 %v212_v5, %v211_v2  ;;  %v210_v8 = vld [vmem:[%s183_s29 + $0x18] sm:$0xff]  ;;  %v213_v9 = vld [vmem:[%s183_s29 + $0x30] sm:$0xff]  ;;  %v328_v14 = vmax.f32 %v211_v2, %v212_v5  ;;  %v369_v18 = vld [vmem:[%s898_s1 + $0x8] sm:$0xff]  ;;  %v339_v24 = vand.u32 127, %v338_v23  ;;  %vm402_vm5 = vcmask 1041408   ;;  %s462_s23 = sshll.u32 %s205_s21, 4  ;;  %s463_s23 = int_to_ptr.vmem [resolvable:$true] %s462_s23 }
  0x25   : > { %323 = vmax.xlane.f32.xlu2 %v322_v3  ;;  %299 = vadd.xlane.f32.xlu0 %v298_v4  ;;  %v214_v10 = vld [vmem:[%s183_s29 + $0x38] sm:$0xff]  ;;  %v325_v11 = vmax.f32 %v209_v7, %v210_v8  ;;  %v301_v12 = vadd.f32 %v210_v8, %v209_v7  ;;  %v370_v17 = vld [vmem:[%s898_s1 + $0x10] sm:$0xff]  ;;  %v368_v19 = vld [vmem:[%s898_s1] sm:$0xff]  ;;  %vm398_vm6 = vcmask 15360   ;;  %s464_s29 = sshll.u32 %s460_s18, 4  ;;  %vm449_vm10 = vcmask 253952   ;;  %s465_s29 = int_to_ptr.hbm [resolvable:$true] %s464_s29 }
  0x26   : > { %305 = vadd.xlane.f32.xlu1 %v304_v6  ;;  %v307_v13 = vadd.f32 %v214_v10, %v213_v9  ;;  %v331_v15 = vmax.f32 %v213_v9, %v214_v10  ;;  %v371_v16 = vld [vmem:[%s898_s1 + $0x18] sm:$0xff]  ;;  %v341_v27 = vadd.s32 4294967288, %v339_v24  ;;  %v345_v30 = vadd.s32 4294967280, %v339_v24  ;;  %v372_v52 = vld [vmem:[%s899_s2] sm:$0x3]  ;;  %s452_s15 = scalar_lea.sflag [#allocation6], %s835_s19 }
  0x27   : > { %389 = vmatpush.msra.mxu0 %v371_v16  ;;  %v349_v35 = vadd.s32 4294967272, %v339_v24  ;;  %551 = vmatpush.msk.msra.mxu1 %vm402_vm5, %v372_v52  ;;  %s669_s22 = sshra.s32 %s465_s29, 4  ;;  %s675_s4 = scalar_lea.hbm %s900_s3, 2  ;;  %s670_s22 = int_to_ptr.hbm [resolvable:$true] %s669_s22 }
  0x28   : > { %s671_s24 = scalar_lea.hbm %s670_s22, 1  ;;  %p676_p7 = scmp.lt.s32.totalorder %s670_s22, %s900_s3 }
  0x29   : > { %390 = vmatpush.msra.mxu0 %v370_v17  ;;  %p672_p4 = scmp.ne.s32.totalorder %s670_s22, %s671_s24  ;;  %p677_p8 = scmp.lt.s32.totalorder %s675_s4, %s671_s24 }
  0x2b   : > { %391 = vmatpush.msra.mxu0 %v369_v18  ;;  %p673_p5 = pnand %p672_p4, %p812_p9  ;;  %p678_p10 = por %p677_p8, %p676_p7 }
  0x2d   : > { %326 = vmax.xlane.f32.xlu2 %v325_v11  ;;  %302 = vadd.xlane.f32.xlu0 %v301_v12  ;;  %p674_p6 = pneg %p673_p5 }
  0x2e   : > { %308 = vadd.xlane.f32.xlu1 %v307_v13  ;;  %392 = vmatpush.msra.mxu0 %v368_v19 }
  0x2f   : > { %p679_p13 = pnand %p678_p10, %p674_p6 }
  0x35   : > { %329 = vmax.xlane.f32.xlu0 %v328_v14 }
  0x36   : > { %332 = vmax.xlane.f32.xlu1 %v331_v15 }
  0x98   : > { %v300_v20 = vpop.xlane.xlu0 %299  ;;  %v324_v21 = vpop.xlane.xlu2 %323 }
  0x99   : > { %v306_v22 = vpop.xlane.xlu1 %305  ;;  %v310_v25 = vmul.f32 0.00390625, %v300_v20  ;;  %v358_v37 = vperm.slane %v324_v21, %v339_v24 }
  0x9a   : > { %v312_v31 = vmul.f32 0.00390625, %v306_v22 }
  0x9b   : > { %v340_v34 = vperm.slane %v310_v25, %v339_v24 }
  0x9c   : > { %v346_v40 = vperm.slane %v312_v31, %v345_v30 }
  0xa0   : > { %v303_v26 = vpop.xlane.xlu0 %302  ;;  %v327_v32 = vpop.xlane.xlu2 %326 }
  0xa1   : > { %v311_v28 = vmul.f32 0.00390625, %v303_v26  ;;  %v309_v29 = vpop.xlane.xlu1 %308  ;;  %v359_v38 = vperm.slane %v327_v32, %v341_v27 }
  0xa2   : > { %v313_v36 = vmul.f32 0.00390625, %v309_v29 }
  0xa3   : > { %v342_v33 = vperm.slane %v311_v28, %v341_v27  ;;  %v360_v46 = vsel %vm343_vm0, %v359_v38, %v358_v37 }
  0xa4   : > { %v350_v41 = vperm.slane %v313_v36, %v349_v35 }
  0xa5   : > { %v344_v39 = vsel %vm343_vm0, %v342_v33, %v340_v34 }
  0xa6   : > { %v348_v45 = vsel %vm347_vm1, %v346_v40, %v344_v39 }
  0xa7   : > { %v352_v49 = vsel %vm351_vm2, %v350_v41, %v348_v45 }
  0xa8   : > { %v330_v42 = vpop.xlane.xlu0 %329 }
  0xa9   : > { %v361_v43 = vperm.slane %v330_v42, %v345_v30  ;;  %v333_v44 = vpop.xlane.xlu1 %332 }
  0xaa   : > { %v363_v47 = vperm.slane %v333_v44, %v349_v35 }
  0xab   : > { %v362_v48 = vsel %vm347_vm1, %v361_v43, %v360_v46 }
  0xac   : > { %v364_v50 = vsel %vm351_vm2, %v363_v47, %v362_v48 }
  0xad   : > { %v367_v51 = vsel %vm366_vm3, %v352_v49, %v364_v50 }
  0xae   : > { %550 = vmatmul.msk.f32.vlgmr.msra.gmra.mxu0 %vm373_vm4, %v367_v51 }
 0x12b   : > { %v394_v53 = vpop.f32.mrf.mxu0 }
 0x12c   : > { %v397_v54 = vmax.f32 %v394_v53, 0.0 }
 0x12e   : > { %552 = vmatmul.msk.f32.vlgmr.msra.gmra.mxu1 %vm398_vm6, %v397_v54 }
 0x1ab   : > { %v423_v55 = vpop.f32.mrf.mxu1 }
 0x1ac   : > { %v427_v56 = vrot.slane %v423_v55, 1 }
 0x1ae   : > { %v429_v57 = vadd.f32 %v427_v56, %v423_v55 }
 0x1b0   : > { %v553_v58 = vmul.f32 -1.442695, %v429_v57 }
 0x1b2   : > { %621 = vpow2.f32 %v553_v58 }
 0x1b8   : > { %v622_v59 = vpop.eup %621 }
 0x1b9   : > { %v433_v60 = vadd.f32 1.0, %v622_v59 }
 0x1bb   : > { %623 = vrcp.f32 %v433_v60  ;;  %v445_v0 = vand.u32 2147483648, %v433_v60  ;;  %v443_v2 = vand.u32 2147483647, %v433_v60  ;;  %vm439_vm8 = vweird.f32 %v433_v60 }
 0x1bd   : > { %v446_v4 = vor.u32 1.1754944e-38, %v445_v0  ;;  %vm444_vm11 = vcmp.eq.f32.partialorder %v443_v2, 8.507059e+37 }
 0x1c1   : > { %v624_v61 = vpop.eup %623 }
 0x1c2   : > { %v435_v62 = vmul.f32 %v624_v61, %v433_v60  ;;  %vm440_vm7 = vweird.f32 %v624_v61 }
 0x1c3   : > { %vm441_vm9 = vmor %vm439_vm8, %vm440_vm7 }
 0x1c4   : > { %v436_v63 = vsub.f32 1.0, %v435_v62 }
 0x1c6   : > { %v437_v1 = vmul.f32 %v624_v61, %v436_v63 }
 0x1c8   : > { %v438_v3 = vadd.f32 %v624_v61, %v437_v1 }
 0x1ca   : > { %v442_v5 = vsel %vm441_vm9, %v624_v61, %v438_v3 }
 0x1cb   : > { %v447_v6 = vsel %vm444_vm11, %v446_v4, %v442_v5 }
 0x1cc   : > { %450 = vst.msk [vmem:[%s205_s21] sm:$0x1] %vm449_vm10, %v447_v6 }
 0x1cd   : > { %682 = shalt.err (!%p679_p13)
}
 0x1ce   : > { %559 = dma.vmem_to_hbm [thread:$0]  (%p812_p9), %s463_s23, 16, %s465_s29, %s452_s15  }
 0x1cf PF: > { %s476_s19 = sand.u32 1, %s717_s12   ;;  %p566_p0 = pnand %p544_p12, %p819_p11 }
 0x1d0   : > { %s477_s7 = scalar_lea.sflag [#allocation6], %s476_s19 }
 0x1d1   : > { %p567_p1 = pneg %p566_p0 }
 0x1d3   : > { %712 = dma.done.wait (%p567_p1), %s477_s7, 16  }
 0x1d4   : > { %714 = vsyncadd (%p567_p1), %s477_s7, 4294967280  ;;  %s19_s17 = sadd.s32 1, %s737_s17   ;;  %s905_s12 = smov %s721_s13 }
 0x1d5   : > { %p16_p2 = scmp.ge.s32.totalorder %s19_s17, 4   ;;  %s906_s13 = smov %s725_s14 }
 0x1d6   : > { %s907_s14 = smov %s817_s26  ;;  %s908_s15 = smov %s733_s16 }
 0x1d7   : > { %s909_s16 = smov %s911_s20  ;;  %18 = sbr.rel (!%p16_p2) target bundleno = 6 (0x6), region = 89 }
 0x1dc   :  { %482 = vsyncpa [#allocation5], 1 }
 0x1dd   :  { %484 = vsyncpa [#allocation5 + $0x1], 1 }
 0x1de   :  { %485 = vsyncpa [#allocation6], 1 }
 0x1df   :  { %487 = vsyncpa [#allocation6 + $0x1], 1 }

</bundles_post_ra>
